<compile_context>
chip_gen: v6e
topology: v6e:2x2x1
jax: 0.10.0
libtpu: 0.0.40
codegen_flags: <defaults>
</compile_context>

<pallas_src>
import functools
import math

import jax
import jax.numpy as jnp
from jax import lax
from jax.experimental import pallas as pl
from jax.experimental.pallas import tpu as pltpu


def _round_up(x, m):
    return (x + m - 1) // m * m


def _gelu_exact(x):
    # torch.nn.GELU() default (approximate='none'): 0.5*x*(1+erf(x/sqrt(2)))
    return 0.5 * x * (1.0 + lax.erf(x * (1.0 / math.sqrt(2.0))))


def _gelu_tanh(x):
    # tanh-approximate GELU; routes the transcendental to the EUP slot.
    c = math.sqrt(2.0 / math.pi)
    return 0.5 * x * (1.0 + jnp.tanh(c * (x + 0.044715 * x * x * x)))


# ---------------------------------------------------------------------------
# Kernel
# ---------------------------------------------------------------------------
def resblock_kernel(x_ref,                       # (TB*C, L)  input block (C-major layout)
                    w1_ref, b1_ref,              # (L, D), (1, D)        temporal in
                    w2_ref, b2_ref,              # (D, L), (1, L)        temporal out
                    w3g_ref, b3g_ref,            # (G*D, G*C), (G*D, 1)  channel in  (block-diag)
                    w4g_ref, b4g_ref,            # (G*C, G*D), (G*C, 1)  channel out (block-diag)
                    o_ref,                       # (TB*C, L)  output block
                    *, approx_gelu):
    act = _gelu_tanh if approx_gelu else _gelu_exact
    cdt = w1_ref.dtype                           # MXU operand dtype (bf16 or f32)

    # ---- temporal mixing: one wide matmul pair over all (batch, channel) rows ----
    xt = x_ref[...]
    h = jnp.dot(xt.astype(cdt), w1_ref[...],
                preferred_element_type=jnp.float32) + b1_ref[...]        # (TB*C, D) f32
    h = act(h)
    y = jnp.dot(h.astype(cdt), w2_ref[...],
                preferred_element_type=jnp.float32) + b2_ref[...]        # (TB*C, L) f32
    # TODO(synk): dropout omitted (eval-mode identity).
    # Park x1 = x + temporal(x) in the output block (doubles as the residual buffer).
    o_ref[...] = (xt.astype(jnp.float32) + y).astype(o_ref.dtype)

    # ---- channel mixing: groups of G batches via block-diagonal weights ----
    w3g = w3g_ref[...]                           # hoisted: loaded once, reused by the loop
    b3g = b3g_ref[...]
    w4g = w4g_ref[...]
    b4g = b4g_ref[...]
    gc = w4g_ref.shape[0]                        # = G*C, a multiple of 8
    n_groups = x_ref.shape[0] // gc              # = TB // G (static)

    def group_body(g, carry):
        r = pl.multiple_of(g * gc, 8)            # 8-aligned dynamic sublane offset
        x1g = o_ref[pl.ds(r, gc), :].astype(jnp.float32)                 # (G*C, L)
        h2 = jnp.dot(w3g, x1g.astype(cdt),
                     preferred_element_type=jnp.float32) + b3g           # (G*D, L)
        h2 = act(h2)
        y2 = jnp.dot(w4g, h2.astype(cdt),
                     preferred_element_type=jnp.float32) + b4g           # (G*C, L)
        o_ref[pl.ds(r, gc), :] = (x1g + y2).astype(o_ref.dtype)
        return carry

    lax.fori_loop(0, n_groups, group_body, 0, unroll=min(n_groups, 2))


# ---------------------------------------------------------------------------
# VMEM budgeting / block choice
# ---------------------------------------------------------------------------
def _vmem_capacity_bytes():
    try:
        cap = getattr(pltpu.get_tpu_info(), "vmem_capacity_bytes", None)
        if cap:
            return int(cap)
    except Exception:                            # non-TPU backend / older jax
        pass
    return 64 << 20                              # conservative: v7x per-core VMEM


def _block_vmem_bytes(tb, L, C, D, G, x_itemsize, c_itemsize):
    """VMEM footprint estimate of one grid step with per-block batch = tb."""
    rows = tb * C                                # multiple of 8 by construction
    Lp, Dp = _round_up(L, 128), _round_up(D, 128)
    GD, GC = G * D, G * C
    GDp, GCp = _round_up(GD, 8), _round_up(GC, 8)
    io = 2 * 2 * rows * Lp * x_itemsize          # input + output block, double-buffered
    w = (_round_up(L, 8) * Dp + _round_up(D, 8) * Lp
         + GDp * _round_up(GC, 128) + GCp * _round_up(GD, 128)) * c_itemsize
    b = (8 * Dp + 8 * Lp + GDp * 128 + GCp * 128) * 4
    weights = 2 * (w + b)                        # constant index map, but 2 buffers allocated
    inter = rows * (Dp + 2 * Lp) * 4 + GDp * Lp * 4   # f32 hiddens + Mosaic temp slack
    return io + weights + inter


def _choose_block_b(B_pad, L, C, D, G, x_itemsize, c_itemsize, budget):
    """Largest per-block batch TB (multiple of G, divisor of B_pad) that fits the VMEM
    budget, preferring even grids with >= 4 steps (>= 2 steps per v7x TensorCore)."""
    cands = [tb for tb in range(G, B_pad + 1, G)
             if B_pad % tb == 0
             and _block_vmem_bytes(tb, L, C, D, G, x_itemsize, c_itemsize) <= budget]
    if not cands:
        return G                                 # smallest legal block

    def rank(tb):
        g = B_pad // tb
        cls = 2 if (g >= 4 and g % 2 == 0) else (1 if g >= 2 else 0)
        return (cls, tb)

    return max(cands, key=rank)


# ---------------------------------------------------------------------------
# Wrapper
# ---------------------------------------------------------------------------
def resblock_forward(x, params, *, block_b=None, compute_dtype=jnp.bfloat16,
                     approx_gelu=True):
    """TSMixer ResBlock forward.  x: (B, L, C).  params as produced by init_params
    (weights stored (in_features, out_features))."""
    B, L, C = x.shape
    w1, b1, w2, b2, w3, b3, w4, b4 = params
    D = w1.shape[1]
    # Explicit layout checks: weights must be (in, out), NOT PyTorch's raw (out, in).
    assert w1.shape == (L, D) and w2.shape == (D, L), "temporal weights must be (in, out)"
    assert w3.shape == (C, D) and w4.shape == (D, C), "channel weights must be (in, out)"

    cdt = jnp.dtype(compute_dtype)
    G = 8 // math.gcd(C, 8)                      # batches per channel group (G*C % 8 == 0)

    # One-time weight prep (tiny; constant-folded under jit).
    w1c = jnp.asarray(w1, cdt)                                            # (L, D)
    w2c = jnp.asarray(w2, cdt)                                            # (D, L)
    b1r = jnp.asarray(b1, jnp.float32).reshape(1, D)
    b2r = jnp.asarray(b2, jnp.float32).reshape(1, L)
    eye = jnp.eye(G, dtype=jnp.float32)
    w3g = jnp.asarray(jnp.kron(eye, jnp.asarray(w3, jnp.float32).T), cdt)  # (G*D, G*C)
    w4g = jnp.asarray(jnp.kron(eye, jnp.asarray(w4, jnp.float32).T), cdt)  # (G*C, G*D)
    b3g = jnp.tile(jnp.asarray(b3, jnp.float32).reshape(D, 1), (G, 1))     # (G*D, 1)
    b4g = jnp.tile(jnp.asarray(b4, jnp.float32).reshape(C, 1), (G, 1))     # (G*C, 1)

    # C-major layout: (B, L, C) -> (B_pad*C, L); lane dim = L / D inside the kernel.
    B_pad = _round_up(B, G)
    xt = jnp.swapaxes(x, 1, 2)                                            # (B, C, L)
    if B_pad != B:
        xt = jnp.pad(xt, ((0, B_pad - B), (0, 0), (0, 0)))
    x2d = xt.reshape(B_pad * C, L)

    # Generation-aware VMEM budget & block choice.
    cap = _vmem_capacity_bytes()
    budget = int(0.45 * cap)
    xi, ci = x.dtype.itemsize, cdt.itemsize
    TB = block_b if block_b is not None else _choose_block_b(
        B_pad, L, C, D, G, xi, ci, budget)
    assert B_pad % TB == 0 and TB % G == 0, "block_b must divide batch and be a multiple of G"
    grid = (B_pad // TB,)
    need = _block_vmem_bytes(TB, L, C, D, G, xi, ci)
    vmem_limit = int(min(max(need + (4 << 20), 32 << 20), int(0.9 * cap)))

    cost = pl.CostEstimate(
        flops=8 * B_pad * C * L * D,
        transcendentals=B_pad * D * (C + L),
        bytes_accessed=(2 * B_pad * C * L * xi
                        + (w1c.size + w2c.size + w3g.size + w4g.size) * ci
                        + (b1r.size + b2r.size + b3g.size + b4g.size) * 4))

    kernel = functools.partial(resblock_kernel, approx_gelu=approx_gelu)
    const = lambda i: (0, 0)                     # weights/biases: fetched once

    out2d = pl.pallas_call(
        kernel,
        out_shape=jax.ShapeDtypeStruct((B_pad * C, L), x.dtype),
        grid_spec=pltpu.PrefetchScalarGridSpec(
            num_scalar_prefetch=0,
            grid=grid,
            in_specs=[
                pl.BlockSpec((TB * C, L), lambda i: (i, 0)),
                pl.BlockSpec((L, D), const), pl.BlockSpec((1, D), const),
                pl.BlockSpec((D, L), const), pl.BlockSpec((1, L), const),
                pl.BlockSpec((G * D, G * C), const), pl.BlockSpec((G * D, 1), const),
                pl.BlockSpec((G * C, G * D), const), pl.BlockSpec((G * C, 1), const),
            ],
            out_specs=pl.BlockSpec((TB * C, L), lambda i: (i, 0)),
        ),
        compiler_params=pltpu.CompilerParams(
            dimension_semantics=("parallel",),
            vmem_limit_bytes=vmem_limit),
        cost_estimate=cost,
    )(x2d, w1c, b1r, w2c, b2r, w3g, b3g, w4g, b4g)

    return out2d.reshape(B_pad, C, L)[:B].swapaxes(1, 2)     # back to (B, L, C)


# ---------------------------------------------------------------------------
# Parameters + pure-JAX reference
# ---------------------------------------------------------------------------
def init_params(key, seq_len, d_model, num_channels):
    """Deterministic init mimicking torch.nn.Linear default (U(-1/sqrt(fan_in), +)).
    Weights stored as (in_features, out_features)."""
    def linear(k, fan_in, fan_out):
        kw, kb = jax.random.split(k)
        bound = 1.0 / math.sqrt(fan_in)
        w = jax.random.uniform(kw, (fan_in, fan_out), jnp.float32, -bound, bound)
        b = jax.random.uniform(kb, (1, fan_out), jnp.float32, -bound, bound)
        return w, b

    k1, k2, k3, k4 = jax.random.split(key, 4)
    w1, b1 = linear(k1, seq_len, d_model)        # temporal: L -> D
    w2, b2 = linear(k2, d_model, seq_len)        # temporal: D -> L
    w3, b3 = linear(k3, num_channels, d_model)   # channel:  C -> D
    w4, b4 = linear(k4, d_model, num_channels)   # channel:  D -> C
    return (w1, b1, w2, b2, w3, b3, w4, b4)


def resblock_reference(x, params, *, approx_gelu=False):
    """Pure-JAX reference of the PyTorch forward (eval mode)."""
    w1, b1, w2, b2, w3, b3, w4, b4 = params
    act = _gelu_tanh if approx_gelu else _gelu_exact
    xt = jnp.swapaxes(x, 1, 2)                               # (B, C, L)
    t = act(xt @ w1 + b1) @ w2 + b2                          # (B, C, L)
    x = x + jnp.swapaxes(t, 1, 2)
    c = act(x @ w3 + b3) @ w4 + b4                           # (B, L, C)
    return x + c


if __name__ == "__main__":
    B, L, C, D = 16, 64, 4, 32    # batch, seq_len, num_channels, d_model

    key = jax.random.PRNGKey(0)
    kx, kp = jax.random.split(key)
    x = jax.random.normal(kx, (B, L, C), dtype=jnp.float32)
    params = init_params(kp, seq_len=L, d_model=D, num_channels=C)

    # Exact path: f32 MXU operands + erf GELU -> matches the PyTorch module (eval mode).
    out_exact = jax.block_until_ready(
        resblock_forward(x, params, compute_dtype=jnp.float32, approx_gelu=False))
    ref_exact = resblock_reference(x, params, approx_gelu=False)
    assert out_exact.shape == (B, L, C)
    assert jnp.allclose(out_exact, ref_exact, atol=1e-5, rtol=1e-5), \
        "f32/erf kernel mismatch vs reference"

    # Default perf path: bf16 MXU operands (f32 accumulation) + tanh GELU (EUP slot).
    out_fast = jax.block_until_ready(resblock_forward(x, params))
    ref_fast = resblock_reference(x, params, approx_gelu=True)
    assert jnp.allclose(out_fast, ref_fast, atol=5e-2, rtol=5e-2), \
        "bf16/tanh kernel mismatch vs reference"

    print("KERNEL_OK")
</pallas_src>

<mosaic_0001>
module attributes {stable_mosaic.version = 11 : i64} {
  func.func @resblock_kernel(%arg0: i32, %arg1: memref<16x64xf32, #tpu.memory_space<vmem>>, %arg2: memref<64x32xf32, #tpu.memory_space<vmem>>, %arg3: memref<1x32xf32, #tpu.memory_space<vmem>>, %arg4: memref<32x64xf32, #tpu.memory_space<vmem>>, %arg5: memref<1x64xf32, #tpu.memory_space<vmem>>, %arg6: memref<64x8xf32, #tpu.memory_space<vmem>>, %arg7: memref<64x1xf32, #tpu.memory_space<vmem>>, %arg8: memref<8x64xf32, #tpu.memory_space<vmem>>, %arg9: memref<8x1xf32, #tpu.memory_space<vmem>>, %arg10: memref<16x64xf32, #tpu.memory_space<vmem>>) attributes {dimension_semantics = [#tpu.dimension_semantics<parallel>], iteration_bounds = array<i64: 4>, scalar_prefetch = 0 : i64, scratch_operands = 0 : i64, tpu.core_type = #tpu.core_type<tc>, window_params = [{transform_indices = @transform_0, window_bounds = array<i64: 16, 64>}, {pipeline_mode = #tpu.pipeline_mode<synchronous>, transform_indices = @transform_1, window_bounds = array<i64: 64, 32>}, {pipeline_mode = #tpu.pipeline_mode<synchronous>, transform_indices = @transform_2, window_bounds = array<i64: 1, 32>}, {pipeline_mode = #tpu.pipeline_mode<synchronous>, transform_indices = @transform_3, window_bounds = array<i64: 32, 64>}, {pipeline_mode = #tpu.pipeline_mode<synchronous>, transform_indices = @transform_4, window_bounds = array<i64: 1, 64>}, {pipeline_mode = #tpu.pipeline_mode<synchronous>, transform_indices = @transform_5, window_bounds = array<i64: 64, 8>}, {pipeline_mode = #tpu.pipeline_mode<synchronous>, transform_indices = @transform_6, window_bounds = array<i64: 64, 1>}, {pipeline_mode = #tpu.pipeline_mode<synchronous>, transform_indices = @transform_7, window_bounds = array<i64: 8, 64>}, {pipeline_mode = #tpu.pipeline_mode<synchronous>, transform_indices = @transform_8, window_bounds = array<i64: 8, 1>}, {transform_indices = @transform_9, window_bounds = array<i64: 16, 64>}]} {
    %c0 = arith.constant 0 : index
    %c0_0 = arith.constant 0 : index
    %0 = vector.load %arg1[%c0, %c0_0] : memref<16x64xf32, #tpu.memory_space<vmem>>, vector<16x64xf32>
    %c0_1 = arith.constant 0 : index
    %c0_2 = arith.constant 0 : index
    %1 = vector.load %arg2[%c0_1, %c0_2] : memref<64x32xf32, #tpu.memory_space<vmem>>, vector<64x32xf32>
    %cst = arith.constant dense<0.000000e+00> : vector<16x32xf32>
    %2 = tpu.matmul %0, %1, %cst {dimension_numbers = #tpu.dot_dimension_numbers<[1], [0], [0], [1], [0, 0, 1, 1], [], []>} : vector<16x64xf32>, vector<64x32xf32>, vector<16x32xf32> -> vector<16x32xf32>
    %c0_3 = arith.constant 0 : index
    %c0_4 = arith.constant 0 : index
    %3 = vector.load %arg3[%c0_3, %c0_4] : memref<1x32xf32, #tpu.memory_space<vmem>>, vector<1x32xf32>
    %4 = vector.broadcast %3 : vector<1x32xf32> to vector<16x32xf32>
    %5 = arith.addf %2, %4 : vector<16x32xf32>
    %cst_5 = arith.constant 5.000000e-01 : f32
    %6 = vector.broadcast %cst_5 : f32 to vector<16x32xf32>
    %7 = arith.mulf %6, %5 : vector<16x32xf32>
    %cst_6 = arith.constant 0.707106769 : f32
    %8 = vector.broadcast %cst_6 : f32 to vector<16x32xf32>
    %9 = arith.mulf %5, %8 : vector<16x32xf32>
    %10 = math.erf %9 : vector<16x32xf32>
    %cst_7 = arith.constant 1.000000e+00 : f32
    %11 = vector.broadcast %cst_7 : f32 to vector<16x32xf32>
    %12 = arith.addf %11, %10 : vector<16x32xf32>
    %13 = arith.mulf %7, %12 : vector<16x32xf32>
    %c0_8 = arith.constant 0 : index
    %c0_9 = arith.constant 0 : index
    %14 = vector.load %arg4[%c0_8, %c0_9] : memref<32x64xf32, #tpu.memory_space<vmem>>, vector<32x64xf32>
    %cst_10 = arith.constant dense<0.000000e+00> : vector<16x64xf32>
    %15 = tpu.matmul %13, %14, %cst_10 {dimension_numbers = #tpu.dot_dimension_numbers<[1], [0], [0], [1], [0, 0, 1, 1], [], []>} : vector<16x32xf32>, vector<32x64xf32>, vector<16x64xf32> -> vector<16x64xf32>
    %c0_11 = arith.constant 0 : index
    %c0_12 = arith.constant 0 : index
    %16 = vector.load %arg5[%c0_11, %c0_12] : memref<1x64xf32, #tpu.memory_space<vmem>>, vector<1x64xf32>
    %17 = vector.broadcast %16 : vector<1x64xf32> to vector<16x64xf32>
    %18 = arith.addf %15, %17 : vector<16x64xf32>
    %19 = arith.addf %0, %18 : vector<16x64xf32>
    %c0_13 = arith.constant 0 : index
    %c0_14 = arith.constant 0 : index
    %20 = vector.load %arg10[%c0_13, %c0_14] : memref<16x64xf32, #tpu.memory_space<vmem>>, vector<16x64xf32>
    tpu.vector_store %arg10[%c0_13, %c0_14], %19 {strides = array<i32>} : memref<16x64xf32, #tpu.memory_space<vmem>>, vector<16x64xf32>,
    %c0_15 = arith.constant 0 : index
    %c0_16 = arith.constant 0 : index
    %21 = vector.load %arg6[%c0_15, %c0_16] : memref<64x8xf32, #tpu.memory_space<vmem>>, vector<64x8xf32>
    %c0_17 = arith.constant 0 : index
    %c0_18 = arith.constant 0 : index
    %22 = vector.load %arg7[%c0_17, %c0_18] : memref<64x1xf32, #tpu.memory_space<vmem>>, vector<64x1xf32>
    %c0_19 = arith.constant 0 : index
    %c0_20 = arith.constant 0 : index
    %23 = vector.load %arg8[%c0_19, %c0_20] : memref<8x64xf32, #tpu.memory_space<vmem>>, vector<8x64xf32>
    %c0_21 = arith.constant 0 : index
    %c0_22 = arith.constant 0 : index
    %24 = vector.load %arg9[%c0_21, %c0_22] : memref<8x1xf32, #tpu.memory_space<vmem>>, vector<8x1xf32>
    %c0_i32 = arith.constant 0 : i32
    %c8_i32 = arith.constant 8 : i32
    %25 = arith.muli %c0_i32, %c8_i32 : i32
    %26 = tpu.assume_multiple %25, 8 : i32
    %27 = arith.index_cast %26 : i32 to index
    %c0_23 = arith.constant 0 : index
    %28 = vector.load %arg10[%27, %c0_23] : memref<16x64xf32, #tpu.memory_space<vmem>>, vector<8x64xf32>
    %cst_24 = arith.constant dense<0.000000e+00> : vector<64x64xf32>
    %29 = tpu.matmul %21, %28, %cst_24 {dimension_numbers = #tpu.dot_dimension_numbers<[1], [0], [0], [1], [0, 0, 1, 1], [], []>} : vector<64x8xf32>, vector<8x64xf32>, vector<64x64xf32> -> vector<64x64xf32>
    %30 = vector.broadcast %22 : vector<64x1xf32> to vector<64x64xf32>
    %31 = arith.addf %29, %30 : vector<64x64xf32>
    %cst_25 = arith.constant 5.000000e-01 : f32
    %32 = vector.broadcast %cst_25 : f32 to vector<64x64xf32>
    %33 = arith.mulf %32, %31 : vector<64x64xf32>
    %cst_26 = arith.constant 0.707106769 : f32
    %34 = vector.broadcast %cst_26 : f32 to vector<64x64xf32>
    %35 = arith.mulf %31, %34 : vector<64x64xf32>
    %36 = math.erf %35 : vector<64x64xf32>
    %cst_27 = arith.constant 1.000000e+00 : f32
    %37 = vector.broadcast %cst_27 : f32 to vector<64x64xf32>
    %38 = arith.addf %37, %36 : vector<64x64xf32>
    %39 = arith.mulf %33, %38 : vector<64x64xf32>
    %cst_28 = arith.constant dense<0.000000e+00> : vector<8x64xf32>
    %40 = tpu.matmul %23, %39, %cst_28 {dimension_numbers = #tpu.dot_dimension_numbers<[1], [0], [0], [1], [0, 0, 1, 1], [], []>} : vector<8x64xf32>, vector<64x64xf32>, vector<8x64xf32> -> vector<8x64xf32>
    %41 = vector.broadcast %24 : vector<8x1xf32> to vector<8x64xf32>
    %42 = arith.addf %40, %41 : vector<8x64xf32>
    %43 = arith.addf %28, %42 : vector<8x64xf32>
    %44 = arith.index_cast %26 : i32 to index
    %c0_29 = arith.constant 0 : index
    %45 = vector.load %arg10[%44, %c0_29] : memref<16x64xf32, #tpu.memory_space<vmem>>, vector<8x64xf32>
    tpu.vector_store %arg10[%44, %c0_29], %43 {strides = array<i32>} : memref<16x64xf32, #tpu.memory_space<vmem>>, vector<8x64xf32>,
    %c1_i32 = arith.constant 1 : i32
    %c8_i32_30 = arith.constant 8 : i32
    %46 = arith.muli %c1_i32, %c8_i32_30 : i32
    %47 = tpu.assume_multiple %46, 8 : i32
    %48 = arith.index_cast %47 : i32 to index
    %c0_31 = arith.constant 0 : index
    %49 = vector.load %arg10[%48, %c0_31] : memref<16x64xf32, #tpu.memory_space<vmem>>, vector<8x64xf32>
    %cst_32 = arith.constant dense<0.000000e+00> : vector<64x64xf32>
    %50 = tpu.matmul %21, %49, %cst_32 {dimension_numbers = #tpu.dot_dimension_numbers<[1], [0], [0], [1], [0, 0, 1, 1], [], []>} : vector<64x8xf32>, vector<8x64xf32>, vector<64x64xf32> -> vector<64x64xf32>
    %51 = vector.broadcast %22 : vector<64x1xf32> to vector<64x64xf32>
    %52 = arith.addf %50, %51 : vector<64x64xf32>
    %cst_33 = arith.constant 5.000000e-01 : f32
    %53 = vector.broadcast %cst_33 : f32 to vector<64x64xf32>
    %54 = arith.mulf %53, %52 : vector<64x64xf32>
    %cst_34 = arith.constant 0.707106769 : f32
    %55 = vector.broadcast %cst_34 : f32 to vector<64x64xf32>
    %56 = arith.mulf %52, %55 : vector<64x64xf32>
    %57 = math.erf %56 : vector<64x64xf32>
    %cst_35 = arith.constant 1.000000e+00 : f32
    %58 = vector.broadcast %cst_35 : f32 to vector<64x64xf32>
    %59 = arith.addf %58, %57 : vector<64x64xf32>
    %60 = arith.mulf %54, %59 : vector<64x64xf32>
    %cst_36 = arith.constant dense<0.000000e+00> : vector<8x64xf32>
    %61 = tpu.matmul %23, %60, %cst_36 {dimension_numbers = #tpu.dot_dimension_numbers<[1], [0], [0], [1], [0, 0, 1, 1], [], []>} : vector<8x64xf32>, vector<64x64xf32>, vector<8x64xf32> -> vector<8x64xf32>
    %62 = vector.broadcast %24 : vector<8x1xf32> to vector<8x64xf32>
    %63 = arith.addf %61, %62 : vector<8x64xf32>
    %64 = arith.addf %49, %63 : vector<8x64xf32>
    %65 = arith.index_cast %47 : i32 to index
    %c0_37 = arith.constant 0 : index
    %66 = vector.load %arg10[%65, %c0_37] : memref<16x64xf32, #tpu.memory_space<vmem>>, vector<8x64xf32>
    tpu.vector_store %arg10[%65, %c0_37], %64 {strides = array<i32>} : memref<16x64xf32, #tpu.memory_space<vmem>>, vector<8x64xf32>,
    %c2_i32 = arith.constant 2 : i32
    return
  }
  func.func @transform_0(%arg0: i32) -> (i32, i32) {
    %c0_i32 = arith.constant 0 : i32
    %c0_i32_0 = arith.constant 0 : i32
    return %arg0, %c0_i32 : i32, i32
  }
  func.func @transform_1(%arg0: i32) -> (i32, i32) {
    %c0_i32 = arith.constant 0 : i32
    %c0_i32_0 = arith.constant 0 : i32
    %c0_i32_1 = arith.constant 0 : i32
    return %c0_i32, %c0_i32_0 : i32, i32
  }
  func.func @transform_2(%arg0: i32) -> (i32, i32) {
    %c0_i32 = arith.constant 0 : i32
    %c0_i32_0 = arith.constant 0 : i32
    %c0_i32_1 = arith.constant 0 : i32
    return %c0_i32, %c0_i32_0 : i32, i32
  }
  func.func @transform_3(%arg0: i32) -> (i32, i32) {
    %c0_i32 = arith.constant 0 : i32
    %c0_i32_0 = arith.constant 0 : i32
    %c0_i32_1 = arith.constant 0 : i32
    return %c0_i32, %c0_i32_0 : i32, i32
  }
  func.func @transform_4(%arg0: i32) -> (i32, i32) {
    %c0_i32 = arith.constant 0 : i32
    %c0_i32_0 = arith.constant 0 : i32
    %c0_i32_1 = arith.constant 0 : i32
    return %c0_i32, %c0_i32_0 : i32, i32
  }
  func.func @transform_5(%arg0: i32) -> (i32, i32) {
    %c0_i32 = arith.constant 0 : i32
    %c0_i32_0 = arith.constant 0 : i32
    %c0_i32_1 = arith.constant 0 : i32
    return %c0_i32, %c0_i32_0 : i32, i32
  }
  func.func @transform_6(%arg0: i32) -> (i32, i32) {
    %c0_i32 = arith.constant 0 : i32
    %c0_i32_0 = arith.constant 0 : i32
    %c0_i32_1 = arith.constant 0 : i32
    return %c0_i32, %c0_i32_0 : i32, i32
  }
  func.func @transform_7(%arg0: i32) -> (i32, i32) {
    %c0_i32 = arith.constant 0 : i32
    %c0_i32_0 = arith.constant 0 : i32
    %c0_i32_1 = arith.constant 0 : i32
    return %c0_i32, %c0_i32_0 : i32, i32
  }
  func.func @transform_8(%arg0: i32) -> (i32, i32) {
    %c0_i32 = arith.constant 0 : i32
    %c0_i32_0 = arith.constant 0 : i32
    %c0_i32_1 = arith.constant 0 : i32
    return %c0_i32, %c0_i32_0 : i32, i32
  }
  func.func @transform_9(%arg0: i32) -> (i32, i32) {
    %c0_i32 = arith.constant 0 : i32
    %c0_i32_0 = arith.constant 0 : i32
    return %arg0, %c0_i32 : i32, i32
  }
}

</mosaic_0001>

<bundles_post_ra>
// kernel: tpu_custom_call.1
= control target key start
LH: loop header
LB: loop body
LE: loop exit
PB: predicated region body
PF: predicated region fallthrough
CT: control target
= control target key end

     0   :  { %14 = vsyncpa [#allocation3], 0  ;;  %s1849_s0 = inlined_call_operand.vmem [shape: f32[64,64], index: 0, kind: input, shape index: {}]   ;;  %s1850_s1 = inlined_call_operand.vmem [shape: f32[64,32], index: 1, kind: input, shape index: {}]   ;;  %s1851_s2 = inlined_call_operand.vmem [shape: f32[1,32], index: 2, kind: input, shape index: {}]   ;;  %s1852_s3 = inlined_call_operand.vmem [shape: f32[32,64], index: 3, kind: input, shape index: {}]   ;;  %s1853_s4 = inlined_call_operand.vmem [shape: f32[1,64], index: 4, kind: input, shape index: {}]   ;;  %s1854_s5 = inlined_call_operand.vmem [shape: f32[64,8], index: 5, kind: input, shape index: {}]   ;;  %s1855_s6 = inlined_call_operand.vmem [shape: f32[64,1], index: 6, kind: input, shape index: {}]   ;;  %s1856_s7 = inlined_call_operand.vmem [shape: f32[8,64], index: 7, kind: input, shape index: {}]   ;;  %s1857_s8 = inlined_call_operand.vmem [shape: f32[8,1], index: 8, kind: input, shape index: {}]   ;;  %s1858_s9 = inlined_call_operand.hbm [shape: f32[64,64], index: 9, kind: output, shape index: {}]  }
   0x1   :  { %16 = vsyncpa [#allocation3 + $0x1], 0  ;;  %s1531_s30 = smov 0   ;;  %s1533_s10 = smov 0  }
   0x2   :  { %s1535_s11 = smov 0   ;;  %s1537_s12 = smov 0  }
   0x3 LB: > { %s1552_s13 = sadd.s32 4294967295, %s1473_s12   ;;  %s1144_s14 = sadd.s32 4294967294, %s1473_s12   ;;  %s1473_s12 = sphi %s1537_s12, %s1864_s12   ;;  %s1469_s11 = sphi %s1535_s11, %s1863_s11   ;;  %s1465_s10 = sphi %s1533_s10, %s1862_s10   ;;  %s1461_s30 = sphi %s1531_s30, %s1861_s30  }
   0x4   : > { %s1556_s15 = sadd.s32 1, %s1473_s12   ;;  %s223_s16 = sadd.s32 1, %s1469_s11 }
   0x5   : > { %s220_s17 = ssub.s32 %s1473_s12, %s1556_s15  ;;  %p233_p0 = scmp.ne.s32.totalorder %s1469_s11, %s1465_s10 }
   0x6   : > { %p221_p1 = scmp.eq.s32.totalorder %s220_s17, 0  ;;  %p234_p2 = scmp.eq.s32.totalorder %s1552_s13, 3 }
   0x7   : > { %p239_p3 = scmp.ne.s32.totalorder %s1465_s10, %s1461_s30  ;;  %p240_p4 = scmp.eq.s32.totalorder %s1144_s14, 3 }
   0x8   : > { %s1567_s18 = scalar_select %p221_p1, %s1469_s11, %s223_s16  }
   0x9   : > { %p1569_p5 = por %p234_p2, %p233_p0  ;;  %p1573_p6 = por %p240_p4, %p239_p3 }
   0xa   : > { %p1147_p7 = scmp.ge.s32.totalorder %s1473_s12, 1  ;;  %p291_p8 = scmp.lt.s32.totalorder %s1473_s12, 5 }
   0xc   : > { %p292_p9 = pnand %p1147_p7, %p291_p8 }
   0xd   : > { %s1149_s25 = sshll.u32 (!%p292_p9), %s1552_s13, 1  ;;  %s324_s24 = sand.u32 (!%p292_p9), 1, %s1465_s10  }
   0xe   : > { %295 = sbr.rel (%p292_p9) target bundleno = 918 (0x396), region = 56  ;;  %p328_p10 = scmp.lt.s32.totalorder (!%p292_p9), %s1149_s25, 7 }
   0xf   : > { %s1148_s27 = sshll.u32 (!%p292_p9), %s324_s24, 4  ;;  %s1478_s16 = smov (!%p292_p9), [#allocation2]  }
  0x10   : > { %s1669_s28 = scalar_lea.vmem (!%p292_p9), [#allocation2], %s1148_s27  ;;  %s1417_s17 = sshll.u32 (!%p292_p9), %s1478_s16, 4  ;;  %s1418_s17 = int_to_ptr.vmem [resolvable:$false] %s1417_s17 }
  0x11   : > { %s1082_s26 = sshll.u32 (!%p292_p9), %s1669_s28, 4  ;;  %s1419_s21 = scalar_lea.vmem (!%p292_p9), %s1418_s17, 512  ;;  %s1802_s26 = int_to_ptr.vmem [resolvable:$true] %s1082_s26 }
  0x12   : > { %p1420_p0 = scmp.lt.s32.totalorder (!%p292_p9), %s1802_s26, %s1418_s17 }
  0x13   : > { %v343_v0 = vld [vmem:[%s1850_s1 + $0x38] sm:$0xff]  ;;  %v342_v1 = vld [vmem:[%s1850_s1 + $0x30] sm:$0xff]  ;;  %v341_v2 = vld [vmem:[%s1850_s1 + $0x28] sm:$0xff]  ;;  %s1866_s25 = smov (!%p328_p10, %s1149_s25), 7  ;;  %vm351_vm0 = vcmask 523264   ;;  %vm454_vm1 = vcmask 261120  }
  0x14   : > { %1235 = vmatprep.subr.mxu0 %v343_v0  ;;  %v340_v3 = vld [vmem:[%s1850_s1 + $0x20] sm:$0xff]  ;;  %s1150_s14 = sshll.u32 %s1866_s25, 3  ;;  %v339_v4 = vld [vmem:[%s1850_s1 + $0x18] sm:$0xff]  ;;  %v338_v6 = vld [vmem:[%s1850_s1 + $0x10] sm:$0xff]  ;;  %vm599_vm2 = vcmask 64512   ;;  %v1475_v32 = vmov 0  }
  0x15   : > { %1236 = vmatpush3.msra.mxu0 %v343_v0  ;;  %s331_s23 = scalar_lea.vmem %s1849_s0, %s1150_s14  ;;  %v337_v7 = vld [vmem:[%s1850_s1 + $0x8] sm:$0xff]  ;;  %v336_v8 = vld [vmem:[%s1850_s1] sm:$0xff]  ;;  %v446_v10 = vld [vmem:[%s1852_s3 + $0x18] sm:$0xff]  ;;  %1375 = vset.pattern.permute.xlu0 %v1475_v32  ;;  %v1476_v56 = vmov 0.0   ;;  %vm1477_vm3 = vmmov 0   ;;  %s1413_s14 = scalar_lea.vmem %s1802_s26, 256 }
  0x16   : > { %1237 = vmatprep.subr.mxu0 %v342_v1  ;;  %v1598_v5 = vld [vmem:[%s331_s23] sm:$0xff]  ;;  %v1611_v9 = vld [vmem:[%s331_s23 + $0x8] sm:$0xff]  ;;  %1254 = vmatprep.subr.mxu1 %v446_v10  ;;  %v445_v11 = vld [vmem:[%s1852_s3 + $0x10] sm:$0xff]  ;;  %s1182_s23 = sshll.u32 %s1552_s13, 8  ;;  %s1809_s13 = scalar_lea.sflag [#allocation3], %s324_s24 }
  0x17   : > { %1238 = vmatpush3.msra.mxu0 %v342_v1  ;;  %1251 = vmatprep.mubr.msk.f32.mxu0 %vm351_vm0, %v1598_v5  ;;  %v444_v12 = vld [vmem:[%s1852_s3 + $0x8] sm:$0xff]  ;;  %v443_v13 = vld [vmem:[%s1852_s3] sm:$0xff]  ;;  %v555_v30 = vld [vmem:[%s1855_s6 + $0x38] sm:$0xff]  ;;  %s1800_s29 = scalar_lea.hbm %s1858_s9, %s1182_s23  ;;  %p1414_p11 = scmp.ne.s32.totalorder %s1802_s26, %s1413_s14 }
  0x18   : > { %1239 = vmatprep.subr.mxu0 %v341_v2  ;;  %1255 = vmatpush3.msra.mxu1 %v446_v10  ;;  %v1151_v14 = vld [vmem:[%s1851_s2] ss:$0 sm:$0xff]  ;;  %v553_v31 = vld [vmem:[%s1855_s6 + $0x28] sm:$0xff]  ;;  %v554_v33 = vld [vmem:[%s1855_s6 + $0x30] sm:$0xff]  ;;  %p1421_p1 = scmp.lt.s32.totalorder %s1419_s21, %s1413_s14 }
  0x19   : > { %1240 = vmatpush3.msra.mxu0 %v341_v2  ;;  %1256 = vmatprep.subr.mxu1 %v445_v11  ;;  %v540_v29 = vld [vmem:[%s1854_s5] sm:$0xff]  ;;  %v551_v35 = vld [vmem:[%s1855_s6 + $0x18] sm:$0xff]  ;;  %v550_v36 = vld [vmem:[%s1855_s6 + $0x10] sm:$0xff]  ;;  %p1415_p12 = pnand %p1414_p11, %p1569_p5 }
  0x1a   : > { %1241 = vmatprep.subr.mxu0 %v340_v3  ;;  %1257 = vmatpush3.msra.mxu1 %v445_v11  ;;  %v552_v34 = vld [vmem:[%s1855_s6 + $0x20] sm:$0xff]  ;;  %v549_v37 = vld [vmem:[%s1855_s6 + $0x8] sm:$0xff]  ;;  %v542_v49 = vld [vmem:[%s1854_s5 + $0x10] sm:$0xff]  ;;  %p1422_p2 = por %p1421_p1, %p1420_p0 }
  0x1b   : > { %1242 = vmatpush3.msra.mxu0 %v340_v3  ;;  %1258 = vmatprep.subr.mxu1 %v444_v12  ;;  %v548_v38 = vld [vmem:[%s1855_s6] sm:$0xff]  ;;  %v541_v48 = vld [vmem:[%s1854_s5 + $0x8] sm:$0xff]  ;;  %v543_v51 = vld [vmem:[%s1854_s5 + $0x18] sm:$0xff]  ;;  %p1416_p13 = pneg %p1415_p12 }
  0x1c   : > { %1243 = vmatprep.subr.mxu0 %v339_v4  ;;  %1259 = vmatpush3.msra.mxu1 %v444_v12  ;;  %v557_v39 = vld [vmem:[%s1857_s8] sm:$0xff]  ;;  %v545_v53 = vld [vmem:[%s1854_s5 + $0x28] sm:$0xff]  ;;  %v546_v54 = vld [vmem:[%s1854_s5 + $0x30] sm:$0xff] }
  0x1d   : > { %1244 = vmatpush3.msra.mxu0 %v339_v4  ;;  %1260 = vmatprep.subr.mxu1 %v443_v13  ;;  %v1154_v40 = vld [vmem:[%s1853_s4] ss:$0 sm:$0xff]  ;;  %v547_v55 = vld [vmem:[%s1854_s5 + $0x38] sm:$0xff]  ;;  %p1423_p3 = pnand %p1422_p2, %p1416_p13 }
  0x1e   : > { %1245 = vmatprep.subr.mxu0 %v338_v6  ;;  %1261 = vmatpush3.msra.mxu1 %v443_v13  ;;  %v544_v52 = vld [vmem:[%s1854_s5 + $0x20] sm:$0xff] }
  0x1f   : > { %1246 = vmatpush3.msra.mxu0 %v338_v6  ;;  %1376 = vset.pattern.permute.xlu1 %v1475_v32 }
  0x20   : > { %1247 = vmatprep.subr.mxu0 %v337_v7  ;;  %596 = vperm.xlu0 %1375, %v555_v30  }
  0x21   : > { %1248 = vmatpush3.msra.mxu0 %v337_v7  ;;  %586 = vperm.xlu1 %1376, %v553_v31  }
  0x22   : > { %1249 = vmatprep.subr.mxu0 %v336_v8 }
  0x23   : > { %1250 = vmatpush3.msra.mxu0 %v336_v8 }
  0x24   : > { %1252 = vmatmul.mubr.msk.f32.vlgmr.msra.gmra.mxu0 %vm351_vm0, %v1611_v9  ;;  %591 = vperm.xlu0 %1375, %v554_v33  }
  0x25   : > { %1300 = vmatprep.mubr.msk.f32.mxu0 %vm599_vm2, %v540_v29  ;;  %581 = vperm.xlu1 %1376, %v552_v34  }
  0x28   : > { %576 = vperm.xlu0 %1375, %v551_v35  }
  0x29   : > { %571 = vperm.xlu1 %1376, %v550_v36  }
  0x2c   : > { %566 = vperm.xlu0 %1375, %v549_v37  }
  0x2d   : > { %561 = vperm.xlu1 %1376, %v548_v38  }
  0x30   : > { %771 = vperm.xlu0 %1375, %v557_v39  }
  0x9b   : > { %v597_v57 = vpop.permute.xlu0 %596 }
  0x9c   : > { %v587_v58 = vpop.permute.xlu1 %586 }
  0x9f   : > { %v592_v60 = vpop.permute.xlu0 %591 }
  0xa0   : > { %v582_v1 = vpop.permute.xlu1 %581 }
  0xa3   : > { %v577_v4 = vpop.permute.xlu0 %576 }
  0xa4   : > { %v572_v11 = vpop.permute.xlu1 %571 }
  0xa8   : > { %v562_v30 = vpop.permute.xlu1 %561 }
  0xe4   : > { %v1253_v15 = vpop.f32.mrf.mxu0 }
  0xe5   : > { %v430_v16 = vadd.f32 %v1253_v15, %v1151_v14 }
  0xe6   : > { %v424_v17 = vpop.f32.mrf.mxu0 }
  0xe7   : > { %v436_v18 = vmul.f32 0.70710677, %v430_v16  ;;  %v425_v19 = vadd.f32 %v1151_v14, %v424_v17  ;;  %v434_v26 = vmul.f32 0.5, %v430_v16 }
  0xe9   : > { %1377 = verf.f32 %v436_v18  ;;  %v435_v20 = vmul.f32 0.70710677, %v425_v19  ;;  %v433_v24 = vmul.f32 0.5, %v425_v19 }
  0xeb   : > { %1379 = verf.f32 %v435_v20 }
  0xf6   : > { %v1378_v21 = vpop.eup %1377 }
  0xf7   : > { %v440_v23 = vadd.f32 1.0, %v1378_v21 }
  0xf8   : > { %v1380_v22 = vpop.eup %1379 }
  0xf9   : > { %v439_v25 = vadd.f32 1.0, %v1380_v22  ;;  %v442_v28 = vmul.f32 %v440_v23, %v434_v26 }
  0xfb   : > { %v441_v27 = vmul.f32 %v439_v25, %v433_v24  ;;  %v567_v25 = vpop.permute.xlu0 %566 }
  0xfd   : > { %1262 = vmatprep.mubr.msk.f32.mxu1 %vm454_vm1, %v441_v27 }
  0xfe   : > { %1263 = vmatmul.mubr.msk.f32.vlgmr.msra.gmra.mxu1 %vm454_vm1, %v442_v28 }
  0xff   : > { %1267 = vmatprep.mubr.msk.f32.mxu1 %vm599_vm2, %v540_v29 }
 0x1be   : > { %v1264_v41 = vpop.f32.mrf.mxu1 }
 0x1bf   : > { %v533_v42 = vadd.f32 %v1264_v41, %v1154_v40 }
 0x1c0   : > { %v527_v43 = vpop.f32.mrf.mxu1 }
 0x1c1   : > { %v537_v44 = vadd.f32 %v533_v42, %v1611_v9  ;;  %v528_v45 = vadd.f32 %v1154_v40, %v527_v43 }
 0x1c3   : > { %539 = vst.msk [vmem:[%s1669_s28 + $0x8] sm:$0xff] %vm351_vm0, %v537_v44  ;;  %v536_v46 = vadd.f32 %v528_v45, %v1598_v5 }
 0x1c5   : > { %538 = vst.msk [vmem:[%s1669_s28] sm:$0xff] %vm351_vm0, %v536_v46 }
 0x1ca   : > { %v1677_v47 = vld [vmem:[%s1669_s28 + $0x8] sm:$0xff] }
 0x1cb   : > { %1298 = vmatprep.subr.mxu0 %v1677_v47 }
 0x1cc   : > { %1299 = vmatpush3.msra.mxu0 %v1677_v47  ;;  %v1688_v50 = vld [vmem:[%s1669_s28] sm:$0xff] }
 0x1cd   : > { %1265 = vmatprep.subr.mxu1 %v1688_v50  ;;  %1301 = vmatmul.mubr.msk.f32.vlgmr.msra.gmra.mxu0 %vm599_vm2, %v541_v48 }
 0x1ce   : > { %1266 = vmatpush3.msra.mxu1 %v1688_v50  ;;  %1303 = vmatprep.mubr.msk.f32.mxu0 %vm599_vm2, %v542_v49 }
 0x1cf   : > { %1268 = vmatmul.mubr.msk.f32.vlgmr.msra.gmra.mxu1 %vm599_vm2, %v541_v48  ;;  %1312 = vmatprep.subr.mxu0 %v1476_v56 }
 0x1d0   : > { %1270 = vmatprep.mubr.msk.f32.mxu1 %vm599_vm2, %v542_v49  ;;  %1279 = vmatprep.subr.mxu1 %v1476_v56 }
 0x1d1   : > { %1304 = vmatmul.mubr.msk.f32.gmra.mxu0 %vm599_vm2, %v543_v51 }
 0x1d2   : > { %1306 = vmatprep.mubr.msk.f32.mxu0 %vm599_vm2, %v544_v52 }
 0x1d3   : > { %1271 = vmatmul.mubr.msk.f32.gmra.mxu1 %vm599_vm2, %v543_v51 }
 0x1d4   : > { %1273 = vmatprep.mubr.msk.f32.mxu1 %vm599_vm2, %v544_v52 }
 0x1d5   : > { %1307 = vmatmul.mubr.msk.f32.gmra.mxu0 %vm599_vm2, %v545_v53 }
 0x1d6   : > { %1309 = vmatprep.mubr.msk.f32.mxu0 %vm599_vm2, %v546_v54 }
 0x1d7   : > { %1274 = vmatmul.mubr.msk.f32.gmra.mxu1 %vm599_vm2, %v545_v53 }
 0x1d8   : > { %1276 = vmatprep.mubr.msk.f32.mxu1 %vm599_vm2, %v546_v54 }
 0x1d9   : > { %1310 = vmatmul.mubr.msk.f32.gmra.mxu0 %vm599_vm2, %v547_v55 }
 0x1da   : > { %1328 = vmatprep.mubr.msk.f32.mxu0 %vm1477_vm3, %v1476_v56 }
 0x1db   : > { %1277 = vmatmul.mubr.msk.f32.gmra.mxu1 %vm599_vm2, %v547_v55 }
 0x1dc   : > { %1295 = vmatprep.mubr.msk.f32.mxu1 %vm1477_vm3, %v1476_v56 }
 0x28d   : > { %v1302_v59 = vpop.f32.mrf.mxu0 }
 0x28e   : > { %v1743_v34 = vadd.f32 %v1302_v59, %v567_v25 }
 0x28f   : > { %v1269_v61 = vpop.f32.mrf.mxu1  ;;  %v917_v62 = vpop.f32.mrf.mxu0 }
 0x290   : > { %v1748_v38 = vadd.f32 %v917_v62, %v562_v30  ;;  %v1751_v40 = vadd.f32 %v1269_v61, %v567_v25  ;;  %v965_v43 = vmul.f32 0.70710677, %v1743_v34 }
 0x291   : > { %v690_v63 = vpop.f32.mrf.mxu1  ;;  %v1305_v0 = vpop.f32.mrf.mxu0 }
 0x292   : > { %v1725_v5 = vadd.f32 %v1305_v0, %v577_v4  ;;  %v1755_v44 = vadd.f32 %v690_v63, %v562_v30  ;;  %v964_v46 = vmul.f32 0.70710677, %v1748_v38  ;;  %v738_v48 = vmul.f32 0.70710677, %v1751_v40 }
 0x293   : > { %v1272_v2 = vpop.f32.mrf.mxu1  ;;  %v927_v3 = vpop.f32.mrf.mxu0 }
 0x294   : > { %v967_v13 = vmul.f32 0.70710677, %v1725_v5  ;;  %v1738_v27 = vadd.f32 %v1272_v2, %v577_v4  ;;  %v1740_v28 = vadd.f32 %v927_v3, %v572_v11  ;;  %v737_v49 = vmul.f32 0.70710677, %v1755_v44 }
 0x295   : > { %v700_v6 = vpop.f32.mrf.mxu1  ;;  %v1308_v7 = vpop.f32.mrf.mxu0 }
 0x296   : > { %v1727_v8 = vadd.f32 %v1308_v7, %v587_v58  ;;  %1381 = verf.f32 %v967_v13  ;;  %v1746_v37 = vadd.f32 %v700_v6, %v572_v11  ;;  %v966_v39 = vmul.f32 0.70710677, %v1740_v28 }
 0x297   : > { %v1275_v9 = vpop.f32.mrf.mxu1  ;;  %v937_v10 = vpop.f32.mrf.mxu0  ;;  %v740_v41 = vmul.f32 0.70710677, %v1738_v27 }
 0x298   : > { %v1729_v12 = vadd.f32 %v937_v10, %v582_v1  ;;  %v969_v16 = vmul.f32 0.70710677, %v1727_v8  ;;  %v1733_v17 = vadd.f32 %v1275_v9, %v587_v58  ;;  %v739_v45 = vmul.f32 0.70710677, %v1746_v37 }
 0x299   : > { %v710_v14 = vpop.f32.mrf.mxu1  ;;  %v1311_v15 = vpop.f32.mrf.mxu0  ;;  %v961_v7 = vmul.f32 0.5, %v1727_v8 }
 0x29a   : > { %v968_v18 = vmul.f32 0.70710677, %v1729_v12  ;;  %v1736_v21 = vadd.f32 %v710_v14, %v582_v1  ;;  %v953_v22 = vadd.f32 %v1311_v15, %v597_v57  ;;  %1383 = verf.f32 %v969_v16 }
 0x29b   : > { %v1278_v19 = vpop.f32.mrf.mxu1  ;;  %v947_v20 = vpop.f32.mrf.mxu0  ;;  %v742_v31 = vmul.f32 0.70710677, %v1733_v17  ;;  %v734_v8 = vmul.f32 0.5, %v1733_v17 }
 0x29c   : > { %v726_v23 = vadd.f32 %v1278_v19, %v597_v57  ;;  %v948_v24 = vadd.f32 %v947_v20, %v592_v60  ;;  %v971_v29 = vmul.f32 0.70710677, %v953_v22  ;;  %1385 = verf.f32 %v968_v18 }
 0x29d   : > { %v720_v26 = vpop.f32.mrf.mxu1  ;;  %v741_v35 = vmul.f32 0.70710677, %v1736_v21  ;;  %v963_v57 = vmul.f32 0.5, %v953_v22  ;;  %v960_v20 = vmul.f32 0.5, %v1729_v12  ;;  %v733_v12 = vmul.f32 0.5, %v1736_v21 }
 0x29e   : > { %v744_v32 = vmul.f32 0.70710677, %v726_v23  ;;  %v970_v33 = vmul.f32 0.70710677, %v948_v24  ;;  %1387 = verf.f32 %v971_v29  ;;  %v721_v36 = vadd.f32 %v720_v26, %v592_v60 }
 0x29f   : > { %v736_v60 = vmul.f32 0.5, %v726_v23  ;;  %v962_v1 = vmul.f32 0.5, %v948_v24  ;;  %v959_v26 = vmul.f32 0.5, %v1725_v5  ;;  %v732_v5 = vmul.f32 0.5, %v1738_v27 }
 0x2a0   : > { %1389 = verf.f32 %v744_v32  ;;  %v743_v42 = vmul.f32 0.70710677, %v721_v36  ;;  %v735_v14 = vmul.f32 0.5, %v721_v36  ;;  %v957_v21 = vmul.f32 0.5, %v1743_v34 }
 0x2a1   : > { %1391 = verf.f32 %v970_v33  ;;  %v730_v34 = vmul.f32 0.5, %v1751_v40 }
 0x2a2   : > { %1393 = verf.f32 %v742_v31 }
 0x2a3   : > { %1395 = verf.f32 %v741_v35  ;;  %v1382_v51 = vpop.eup %1381 }
 0x2a4   : > { %1397 = verf.f32 %v743_v42  ;;  %v983_v18 = vadd.f32 1.0, %v1382_v51  ;;  %v956_v51 = vmul.f32 0.5, %v1748_v38  ;;  %v729_v38 = vmul.f32 0.5, %v1755_v44  ;;  %v772_v44 = vpop.permute.xlu0 %771 }
 0x2a5   : > { %1399 = verf.f32 %v966_v39  ;;  %v958_v39 = vmul.f32 0.5, %v1740_v28 }
 0x2a6   : > { %1401 = verf.f32 %v740_v41  ;;  %v991_v36 = vmul.f32 %v983_v18, %v959_v26 }
 0x2a7   : > { %1403 = verf.f32 %v965_v43  ;;  %v1384_v52 = vpop.eup %1383 }
 0x2a8   : > { %1405 = verf.f32 %v739_v45  ;;  %v985_v63 = vadd.f32 1.0, %v1384_v52 }
 0x2a9   : > { %1407 = verf.f32 %v964_v46  ;;  %v1386_v53 = vpop.eup %1385 }
 0x2aa   : > { %1409 = verf.f32 %v738_v48  ;;  %v984_v9 = vadd.f32 1.0, %v1386_v53  ;;  %v993_v19 = vmul.f32 %v985_v63, %v961_v7 }
 0x2ab   : > { %v1388_v54 = vpop.eup %1387  ;;  %1411 = verf.f32 %v737_v49  ;;  %v731_v49 = vmul.f32 0.5, %v1746_v37  ;;  %v556_v37 = vld [vmem:[%s1856_s7] sm:$0xff] }
 0x2ac   : > { %v987_v58 = vadd.f32 1.0, %v1388_v54  ;;  %v992_v30 = vmul.f32 %v984_v9, %v960_v20 }
 0x2ad   : > { %v1390_v55 = vpop.eup %1389 }
 0x2ae   : > { %v1392_v59 = vpop.eup %1391  ;;  %v760_v61 = vadd.f32 1.0, %v1390_v55  ;;  %v995_v0 = vmul.f32 %v987_v58, %v963_v57 }
 0x2af   : > { %v1394_v62 = vpop.eup %1393  ;;  %v986_v2 = vadd.f32 1.0, %v1392_v59 }
 0x2b0   : > { %v1396_v3 = vpop.eup %1395  ;;  %v768_v4 = vmul.f32 %v760_v61, %v736_v60  ;;  %1313 = vmatpush3.msra.mxu0 %v995_v0  ;;  %v758_v13 = vadd.f32 1.0, %v1394_v62 }
 0x2b1   : > { %v1398_v6 = vpop.eup %1397  ;;  %v994_v10 = vmul.f32 %v986_v2, %v962_v1  ;;  %1314 = vmatprep.subr.mxu0 %v1476_v56  ;;  %v757_v23 = vadd.f32 1.0, %v1396_v3 }
 0x2b2   : > { %v1400_v11 = vpop.eup %1399  ;;  %v759_v15 = vadd.f32 1.0, %v1398_v6  ;;  %1280 = vmatpush3.msra.mxu1 %v768_v4  ;;  %v766_v33 = vmul.f32 %v758_v13, %v734_v8 }
 0x2b3   : > { %v1402_v16 = vpop.eup %1401  ;;  %1315 = vmatpush3.msra.mxu0 %v994_v10  ;;  %1281 = vmatprep.subr.mxu1 %v1476_v56  ;;  %v982_v29 = vadd.f32 1.0, %v1400_v11  ;;  %v765_v42 = vmul.f32 %v757_v23, %v733_v12 }
 0x2b4   : > { %v1404_v22 = vpop.eup %1403  ;;  %v767_v24 = vmul.f32 %v759_v15, %v735_v14  ;;  %1316 = vmatprep.subr.mxu0 %v1476_v56  ;;  %v756_v32 = vadd.f32 1.0, %v1402_v16 }
 0x2b5   : > { %v1406_v25 = vpop.eup %1405  ;;  %1317 = vmatpush3.msra.mxu0 %v993_v19  ;;  %v981_v17 = vadd.f32 1.0, %v1404_v22  ;;  %v990_v46 = vmul.f32 %v982_v29, %v958_v39 }
 0x2b6   : > { %v1408_v31 = vpop.eup %1407  ;;  %1282 = vmatpush3.msra.mxu1 %v767_v24  ;;  %1318 = vmatprep.subr.mxu0 %v1476_v56  ;;  %v755_v41 = vadd.f32 1.0, %v1406_v25  ;;  %v764_v28 = vmul.f32 %v756_v32, %v732_v5 }
 0x2b7   : > { %v1410_v35 = vpop.eup %1409  ;;  %1283 = vmatprep.subr.mxu1 %v1476_v56  ;;  %1319 = vmatpush3.msra.mxu0 %v992_v30  ;;  %v980_v45 = vadd.f32 1.0, %v1408_v31  ;;  %v989_v27 = vmul.f32 %v981_v17, %v957_v21 }
 0x2b8   : > { %1284 = vmatpush3.msra.mxu1 %v766_v33  ;;  %1320 = vmatprep.subr.mxu0 %v1476_v56  ;;  %v1412_v43 = vpop.eup %1411  ;;  %v754_v48 = vadd.f32 1.0, %v1410_v35  ;;  %v763_v53 = vmul.f32 %v755_v41, %v731_v49 }
 0x2b9   : > { %1285 = vmatprep.subr.mxu1 %v1476_v56  ;;  %1321 = vmatpush3.msra.mxu0 %v991_v36  ;;  %v753_v52 = vadd.f32 1.0, %v1412_v43  ;;  %v988_v54 = vmul.f32 %v980_v45, %v956_v51 }
 0x2ba   : > { %1286 = vmatpush3.msra.mxu1 %v765_v42  ;;  %1322 = vmatprep.subr.mxu0 %v1476_v56  ;;  %v762_v55 = vmul.f32 %v754_v48, %v730_v34 }
 0x2bb   : > { %1287 = vmatprep.subr.mxu1 %v1476_v56  ;;  %1323 = vmatpush3.msra.mxu0 %v990_v46  ;;  %v761_v40 = vmul.f32 %v753_v52, %v729_v38 }
 0x2bc   : > { %1288 = vmatpush3.msra.mxu1 %v764_v28  ;;  %1324 = vmatprep.subr.mxu0 %v1476_v56 }
 0x2bd   : > { %1289 = vmatprep.subr.mxu1 %v1476_v56  ;;  %1325 = vmatpush3.msra.mxu0 %v989_v27 }
 0x2be   : > { %1290 = vmatpush3.msra.mxu1 %v763_v53  ;;  %1326 = vmatprep.subr.mxu0 %v1476_v56 }
 0x2bf   : > { %1291 = vmatprep.subr.mxu1 %v1476_v56  ;;  %1327 = vmatpush3.msra.mxu0 %v988_v54 }
 0x2c0   : > { %1292 = vmatpush3.msra.mxu1 %v762_v55  ;;  %1329 = vmatmul.mubr.msk.f32.vlgmr.msra.gmra.mxu0 %vm351_vm0, %v556_v37 }
 0x2c1   : > { %1293 = vmatprep.subr.mxu1 %v1476_v56 }
 0x2c2   : > { %1294 = vmatpush3.msra.mxu1 %v761_v40 }
 0x2c3   : > { %1296 = vmatmul.mubr.msk.f32.vlgmr.msra.gmra.mxu1 %vm351_vm0, %v556_v37 }
 0x380   : > { %v1062_v57 = vpop.f32.mrf.mxu0 }
 0x381   : > { %v1063_v58 = vadd.f32 %v1062_v57, %v772_v44 }
 0x382   : > { %v1330_v59 = vpop.f32.mrf.mxu0 }
 0x383   : > { %v1066_v60 = vadd.f32 %v1677_v47, %v1063_v58  ;;  %v843_v61 = vpop.f32.mrf.mxu1 }
 0x384   : > { %v844_v62 = vadd.f32 %v843_v61, %v772_v44 }
 0x385   : > { %1176 = vst.msk [vmem:[%s1669_s28 + $0x8] sm:$0xff] %vm351_vm0, %v1066_v60  ;;  %v1297_v63 = vpop.f32.mrf.mxu1 }
 0x386   : > { %v847_v56 = vadd.f32 %v844_v62, %v1688_v50 }
 0x388   : > { %848 = vst.msk [vmem:[%s1669_s28] sm:$0xff] %vm351_vm0, %v847_v56 }
 0x389   : > { %1426 = shalt.err (!%p1423_p3)
}
 0x38a   : > { %s1427_s24 = scalar_lea.hbm %s1800_s29, 256  ;;  %s1431_s23 = scalar_lea.hbm %s1858_s9, 1024 }
 0x38b   : > { %p1428_p4 = scmp.ne.s32.totalorder %s1800_s29, %s1427_s24  ;;  %p1432_p9 = scmp.lt.s32.totalorder %s1800_s29, %s1858_s9 }
 0x38c   : > { %p1433_p10 = scmp.lt.s32.totalorder %s1431_s23, %s1427_s24 }
 0x38d   : > { %p1429_p7 = pnand %p1428_p4, %p1569_p5 }
 0x38e   : > { %p1434_p11 = por %p1433_p10, %p1432_p9 }
 0x38f   : > { %p1430_p8 = pneg %p1429_p7 }
 0x391   : > { %p1435_p12 = pnand %p1434_p11, %p1430_p8 }
 0x393   : > { %1438 = shalt.err (!%p1435_p12)
}
 0x394   : > { %s1479_s14 = smov 128   ;;  %s1480_s16 = smov 8  }
 0x395   : > { %1331 = dma.vmem_to_hbm [thread:$0]  (%p1569_p5), %s1802_s26, 256, %s1800_s29, %s1809_s13, %s1479_s14, %s1479_s14, %s1480_s16  }
 0x396 PF: > { %p1337_p13 = scmp.ge.s32.totalorder %s1473_s12, 2  ;;  %s1097_s17 = sand.u32 1, %s1461_s30  }
 0x397   : > { %s1098_s21 = scalar_lea.sflag [#allocation3], %s1097_s17 }
 0x398   : > { %p1334_p0 = pnand %p1337_p13, %p1573_p6 }
 0x39a   : > { %p1335_p1 = pneg %p1334_p0 }
 0x39c   : > { %1456 = dma.done.wait (%p1335_p1), %s1098_s21, 256  }
 0x39d   : > { %1458 = vsyncadd (%p1335_p1), %s1098_s21, 4294967040  ;;  %p19_p2 = scmp.ge.s32.totalorder %s1556_s15, 6   ;;  %s1861_s30 = smov %s1465_s10 }
 0x39e   : > { %s1862_s10 = smov %s1469_s11  ;;  %s1863_s11 = smov %s1567_s18 }
 0x39f   : > { %s1864_s12 = smov %s1556_s15  ;;  %21 = sbr.rel (!%p19_p2) target bundleno = 3 (0x3), region = 92 }
 0x3a4   :  { %1103 = vsyncpa [#allocation3], 1 }
 0x3a5   :  { %1105 = vsyncpa [#allocation3 + $0x1], 1 }

</bundles_post_ra>
